<compile_context>
chip_gen: v7x
topology: tpu7x:2x2x1
jax: 0.10.0
libtpu: 0.0.40
codegen_flags: <defaults>
</compile_context>

<pallas_src>
import functools

import jax
import jax.numpy as jnp
from jax.experimental import pallas as pl
from jax.experimental.pallas import tpu as pltpu

LOG_STD_MAX = 2.0
LOG_STD_MIN = -5.0

HIDDEN = 256
HEAD_PAD = 128     # lane-dense fused head width (must be >= 2 * act_dim)
TILE_B = 256       # rows per grid step on the large-batch path
SMALL_B = 256      # batches <= this use the single grid-less call


def _actor_kernel(act_dim, x_ref, w1_ref, b1_ref, w2_ref, b2_ref,
                  wh_ref, bh_ref, out_ref):
    x = x_ref[...]                                             # (tb, obs_dim)

    # fc1 + ReLU (bf16 MXU inputs, f32 accumulate, f32 elementwise)
    h1 = jnp.dot(x.astype(jnp.bfloat16), w1_ref[...],
                 preferred_element_type=jnp.float32) + b1_ref[...]
    h1 = jnp.maximum(h1, 0.0)

    # fc2 + ReLU
    # TODO(synk): on v7x only, w2 (the largest weight) could be stored fp8 with
    # a per-channel scale folded into b2; skipped here (no native fp8 on v5e/v6e).
    h2 = jnp.dot(h1.astype(jnp.bfloat16), w2_ref[...],
                 preferred_element_type=jnp.float32) + b2_ref[...]
    h2 = jnp.maximum(h2, 0.0)

    # Fused heads: one (tb, HEAD_PAD) matmul; cols [0:act_dim) -> mean,
    # cols [act_dim:2*act_dim) -> log_std (before squash), rest padding.
    head = jnp.dot(h2.astype(jnp.bfloat16), wh_ref[...],
                   preferred_element_type=jnp.float32) + bh_ref[...]

    # tanh squash + rescale on the whole slab (EUP slot has slack), then
    # lane-select so only log_std columns get the transform.
    squashed = LOG_STD_MIN + 0.5 * (LOG_STD_MAX - LOG_STD_MIN) * (jnp.tanh(head) + 1.0)
    col = jax.lax.broadcasted_iota(jnp.int32, head.shape, 1)
    out_ref[...] = jnp.where(col < act_dim, head, squashed).astype(out_ref.dtype)


def _cost_estimate(B, obs_dim, x, params, out_bytes_per_elem):
    w1, b1, w2, b2, wh, bh = params
    return pl.CostEstimate(
        flops=2 * B * (obs_dim * HIDDEN + HIDDEN * HIDDEN + HIDDEN * HEAD_PAD),
        transcendentals=B * HEAD_PAD,
        bytes_accessed=(x.size * x.dtype.itemsize
                        + (w1.size + w2.size + wh.size) * 2
                        + (b1.size + b2.size + bh.size) * 4
                        + B * HEAD_PAD * out_bytes_per_elem),
    )


def make_actor_forward(act_dim):
    """Builds a jitted forward: (x, params) -> (mean, log_std).

    For B <= SMALL_B: single grid-less pallas_call, f32 output slab.
    For B  > SMALL_B: gridded over B (TILE_B rows / step), VMEM-resident
    weights, "parallel" grid axis (v7x megacore), bf16 output slab.
    """
    assert 2 * act_dim <= HEAD_PAD, (
        f"act_dim={act_dim} too large: need 2*act_dim <= HEAD_PAD={HEAD_PAD}")
    kernel = functools.partial(_actor_kernel, act_dim)

    def _small_call(x, params):
        w1, b1, w2, b2, wh, bh = params
        B, obs_dim = x.shape
        full = lambda shape: pl.BlockSpec(shape, lambda: (0,) * len(shape))
        # TODO(synk): on v5e the ~200 KiB weight DMA could be hidden with a
        # cross-call prefetch (P10) issued earlier in the RL step; not done here.
        return pl.pallas_call(
            kernel,
            out_shape=jax.ShapeDtypeStruct((B, HEAD_PAD), jnp.float32),
            in_specs=[
                full((B, obs_dim)),
                full((obs_dim, HIDDEN)), full((1, HIDDEN)),
                full((HIDDEN, HIDDEN)), full((1, HIDDEN)),
                full((HIDDEN, HEAD_PAD)), full((1, HEAD_PAD)),
            ],
            out_specs=full((B, HEAD_PAD)),
            compiler_params=pltpu.CompilerParams(vmem_limit_bytes=4 * 1024 * 1024),
            cost_estimate=_cost_estimate(B, obs_dim, x, params, 4),
        )(x, w1, b1, w2, b2, wh, bh)

    def _tiled_call(x, params):
        w1, b1, w2, b2, wh, bh = params
        B, obs_dim = x.shape
        grid = (pl.cdiv(B, TILE_B),)
        # Constant index_map -> weights/biases DMA'd once, VMEM-resident.
        resident = lambda shape: pl.BlockSpec(shape, lambda i: (0,) * len(shape))
        return pl.pallas_call(
            kernel,
            out_shape=jax.ShapeDtypeStruct((B, HEAD_PAD), jnp.bfloat16),
            grid=grid,
            in_specs=[
                pl.BlockSpec((TILE_B, obs_dim), lambda i: (i, 0)),
                resident((obs_dim, HIDDEN)), resident((1, HIDDEN)),
                resident((HIDDEN, HIDDEN)), resident((1, HIDDEN)),
                resident((HIDDEN, HEAD_PAD)), resident((1, HEAD_PAD)),
            ],
            out_specs=pl.BlockSpec((TILE_B, HEAD_PAD), lambda i: (i, 0)),
            compiler_params=pltpu.CompilerParams(
                dimension_semantics=("parallel",),   # v7x: shard tiles on both TCs
                vmem_limit_bytes=16 * 1024 * 1024,   # scaled to TILE_B footprint
            ),
            cost_estimate=_cost_estimate(B, obs_dim, x, params, 2),
        )(x, w1, b1, w2, b2, wh, bh)

    @jax.jit
    def forward(x, params):
        B = x.shape[0]
        out = _tiled_call(x, params) if B > SMALL_B else _small_call(x, params)
        return out[:, :act_dim], out[:, act_dim:2 * act_dim]

    return forward


def init_actor_params(key, obs_dim, act_dim):
    """Init mimicking nn.Linear's default U(-1/sqrt(fan_in), +1/sqrt(fan_in)).

    Returns fused params (w1, b1, w2, b2, wh, bh):
      - w1, w2, wh stored bfloat16 (matmul weights), b* stored float32
      - wh/bh are [fc_mean | fc_logstd | zero-pad] concatenated to HEAD_PAD cols.
    """
    assert 2 * act_dim <= HEAD_PAD, (
        f"act_dim={act_dim} too large: need 2*act_dim <= HEAD_PAD={HEAD_PAD}")
    keys = jax.random.split(key, 8)

    def linear(kw, kb, fan_in, fan_out):
        bound = 1.0 / jnp.sqrt(jnp.float32(fan_in))
        w = jax.random.uniform(kw, (fan_in, fan_out), jnp.float32, -bound, bound)
        b = jax.random.uniform(kb, (1, fan_out), jnp.float32, -bound, bound)
        return w, b

    w1, b1 = linear(keys[0], keys[1], obs_dim, HIDDEN)
    w2, b2 = linear(keys[2], keys[3], HIDDEN, HIDDEN)
    wm, bm = linear(keys[4], keys[5], HIDDEN, act_dim)
    ws, bs = linear(keys[6], keys[7], HIDDEN, act_dim)

    pad_cols = HEAD_PAD - 2 * act_dim
    wh = jnp.concatenate([wm, ws, jnp.zeros((HIDDEN, pad_cols), jnp.float32)], axis=1)
    bh = jnp.concatenate([bm, bs, jnp.zeros((1, pad_cols), jnp.float32)], axis=1)

    return (w1.astype(jnp.bfloat16), b1,
            w2.astype(jnp.bfloat16), b2,
            wh.astype(jnp.bfloat16), bh)


def _reference_forward(x, params, act_dim):
    """Plain-JAX reference matching the PyTorch forward semantics with the
    kernel's bf16-input / f32-accumulate precision choices."""
    w1, b1, w2, b2, wh, bh = params
    h = jax.nn.relu(jnp.dot(x.astype(jnp.bfloat16), w1,
                            preferred_element_type=jnp.float32) + b1)
    h = jax.nn.relu(jnp.dot(h.astype(jnp.bfloat16), w2,
                            preferred_element_type=jnp.float32) + b2)
    head = jnp.dot(h.astype(jnp.bfloat16), wh,
                   preferred_element_type=jnp.float32) + bh
    mean = head[:, :act_dim]
    log_std = jnp.tanh(head[:, act_dim:2 * act_dim])
    log_std = LOG_STD_MIN + 0.5 * (LOG_STD_MAX - LOG_STD_MIN) * (log_std + 1.0)
    return mean, log_std


if __name__ == "__main__":
    key = jax.random.PRNGKey(0)
    k_obs, k_obs_big, k_params = jax.random.split(key, 3)

    OBS_DIM, ACT_DIM = 16, 8
    params = init_actor_params(k_params, OBS_DIM, ACT_DIM)
    actor_forward = make_actor_forward(ACT_DIM)

    # --- Small-batch (grid-less) path: B=2 ---------------------------------
    B_SMALL = 2
    x = jax.random.normal(k_obs, (B_SMALL, OBS_DIM), jnp.float32)
    mean, log_std = actor_forward(x, params)
    mean = jax.block_until_ready(mean)
    log_std = jax.block_until_ready(log_std)

    mean_ref, log_std_ref = _reference_forward(x, params, ACT_DIM)
    assert mean.shape == (B_SMALL, ACT_DIM) and log_std.shape == (B_SMALL, ACT_DIM)
    assert jnp.allclose(mean, mean_ref, atol=2e-3, rtol=2e-3)
    assert jnp.allclose(log_std, log_std_ref, atol=2e-3, rtol=2e-3)
    assert bool(jnp.all(log_std >= LOG_STD_MIN)) and bool(jnp.all(log_std <= LOG_STD_MAX))

    # --- Large-batch (gridded, bf16-out) path: B=512 ------------------------
    B_BIG = 512
    x_big = jax.random.normal(k_obs_big, (B_BIG, OBS_DIM), jnp.float32)
    mean_b, log_std_b = actor_forward(x_big, params)
    mean_b = jax.block_until_ready(mean_b)
    log_std_b = jax.block_until_ready(log_std_b)

    mean_b_ref, log_std_b_ref = _reference_forward(x_big, params, ACT_DIM)
    assert mean_b.shape == (B_BIG, ACT_DIM) and log_std_b.shape == (B_BIG, ACT_DIM)
    # bf16 output slab on the large-batch path -> looser tolerance.
    assert jnp.allclose(mean_b.astype(jnp.float32), mean_b_ref, atol=5e-2, rtol=5e-2)
    assert jnp.allclose(log_std_b.astype(jnp.float32), log_std_b_ref, atol=5e-2, rtol=5e-2)
    assert bool(jnp.all(log_std_b.astype(jnp.float32) >= LOG_STD_MIN - 1e-2))
    assert bool(jnp.all(log_std_b.astype(jnp.float32) <= LOG_STD_MAX + 1e-2))

    # TODO(synk): get_action's Normal.rsample / log_prob / action_scale-bias
    # rescale stay in plain JAX glue around this kernel; only the MLP hot path
    # is fused here.
    print("KERNEL_OK")
</pallas_src>

<mosaic_0001>
module attributes {stable_mosaic.version = 11 : i64} {
  func.func @_actor_kernel(%arg0: memref<2x16xf32, #tpu.memory_space<vmem>>, %arg1: memref<16x256xbf16, #tpu.memory_space<vmem>>, %arg2: memref<1x256xf32, #tpu.memory_space<vmem>>, %arg3: memref<256x256xbf16, #tpu.memory_space<vmem>>, %arg4: memref<1x256xf32, #tpu.memory_space<vmem>>, %arg5: memref<256x128xbf16, #tpu.memory_space<vmem>>, %arg6: memref<1x128xf32, #tpu.memory_space<vmem>>, %arg7: memref<2x128xf32, #tpu.memory_space<vmem>>) attributes {dimension_semantics = [], scalar_prefetch = 0 : i64, scratch_operands = 0 : i64, tpu.core_type = #tpu.core_type<tc>} {
    %c0 = arith.constant 0 : index
    %c0_0 = arith.constant 0 : index
    %0 = vector.load %arg0[%c0, %c0_0] : memref<2x16xf32, #tpu.memory_space<vmem>>, vector<2x16xf32>
    %1 = arith.truncf %0 : vector<2x16xf32> to vector<2x16xbf16>
    %c0_1 = arith.constant 0 : index
    %c0_2 = arith.constant 0 : index
    %2 = vector.load %arg1[%c0_1, %c0_2] : memref<16x256xbf16, #tpu.memory_space<vmem>>, vector<16x256xbf16>
    %cst = arith.constant dense<0.000000e+00> : vector<2x256xf32>
    %3 = tpu.matmul %1, %2, %cst {dimension_numbers = #tpu.dot_dimension_numbers<[1], [0], [0], [1], [0, 0, 1, 1], [], []>} : vector<2x16xbf16>, vector<16x256xbf16>, vector<2x256xf32> -> vector<2x256xf32>
    %c0_3 = arith.constant 0 : index
    %c0_4 = arith.constant 0 : index
    %4 = vector.load %arg2[%c0_3, %c0_4] : memref<1x256xf32, #tpu.memory_space<vmem>>, vector<1x256xf32>
    %5 = vector.broadcast %4 : vector<1x256xf32> to vector<2x256xf32>
    %6 = arith.addf %3, %5 : vector<2x256xf32>
    %cst_5 = arith.constant 0.000000e+00 : f32
    %7 = vector.broadcast %cst_5 : f32 to vector<2x256xf32>
    %8 = arith.maximumf %6, %7 : vector<2x256xf32>
    %9 = arith.truncf %8 : vector<2x256xf32> to vector<2x256xbf16>
    %c0_6 = arith.constant 0 : index
    %c0_7 = arith.constant 0 : index
    %10 = vector.load %arg3[%c0_6, %c0_7] : memref<256x256xbf16, #tpu.memory_space<vmem>>, vector<256x256xbf16>
    %cst_8 = arith.constant dense<0.000000e+00> : vector<2x256xf32>
    %11 = tpu.matmul %9, %10, %cst_8 {dimension_numbers = #tpu.dot_dimension_numbers<[1], [0], [0], [1], [0, 0, 1, 1], [], []>} : vector<2x256xbf16>, vector<256x256xbf16>, vector<2x256xf32> -> vector<2x256xf32>
    %c0_9 = arith.constant 0 : index
    %c0_10 = arith.constant 0 : index
    %12 = vector.load %arg4[%c0_9, %c0_10] : memref<1x256xf32, #tpu.memory_space<vmem>>, vector<1x256xf32>
    %13 = vector.broadcast %12 : vector<1x256xf32> to vector<2x256xf32>
    %14 = arith.addf %11, %13 : vector<2x256xf32>
    %cst_11 = arith.constant 0.000000e+00 : f32
    %15 = vector.broadcast %cst_11 : f32 to vector<2x256xf32>
    %16 = arith.maximumf %14, %15 : vector<2x256xf32>
    %17 = arith.truncf %16 : vector<2x256xf32> to vector<2x256xbf16>
    %c0_12 = arith.constant 0 : index
    %c0_13 = arith.constant 0 : index
    %18 = vector.load %arg5[%c0_12, %c0_13] : memref<256x128xbf16, #tpu.memory_space<vmem>>, vector<256x128xbf16>
    %cst_14 = arith.constant dense<0.000000e+00> : vector<2x128xf32>
    %19 = tpu.matmul %17, %18, %cst_14 {dimension_numbers = #tpu.dot_dimension_numbers<[1], [0], [0], [1], [0, 0, 1, 1], [], []>} : vector<2x256xbf16>, vector<256x128xbf16>, vector<2x128xf32> -> vector<2x128xf32>
    %c0_15 = arith.constant 0 : index
    %c0_16 = arith.constant 0 : index
    %20 = vector.load %arg6[%c0_15, %c0_16] : memref<1x128xf32, #tpu.memory_space<vmem>>, vector<1x128xf32>
    %21 = vector.broadcast %20 : vector<1x128xf32> to vector<2x128xf32>
    %22 = arith.addf %19, %21 : vector<2x128xf32>
    %23 = math.tanh %22 : vector<2x128xf32>
    %cst_17 = arith.constant 1.000000e+00 : f32
    %24 = vector.broadcast %cst_17 : f32 to vector<2x128xf32>
    %25 = arith.addf %23, %24 : vector<2x128xf32>
    %cst_18 = arith.constant 3.500000e+00 : f32
    %26 = vector.broadcast %cst_18 : f32 to vector<2x128xf32>
    %27 = arith.mulf %26, %25 : vector<2x128xf32>
    %cst_19 = arith.constant -5.000000e+00 : f32
    %28 = vector.broadcast %cst_19 : f32 to vector<2x128xf32>
    %29 = arith.addf %28, %27 : vector<2x128xf32>
    %30 = tpu.iota {dimensions = array<i32: 1>} : vector<2x128xi32>
    %c8_i32 = arith.constant 8 : i32
    %31 = vector.broadcast %c8_i32 : i32 to vector<2x128xi32>
    %32 = arith.cmpi slt, %30, %31 : vector<2x128xi32>
    %33 = arith.select %32, %22, %29 : vector<2x128xi1>, vector<2x128xf32>
    %c0_20 = arith.constant 0 : index
    %c0_21 = arith.constant 0 : index
    %34 = vector.load %arg7[%c0_20, %c0_21] : memref<2x128xf32, #tpu.memory_space<vmem>>, vector<2x128xf32>
    tpu.vector_store %arg7[%c0_20, %c0_21], %33 {strides = array<i32>} : memref<2x128xf32, #tpu.memory_space<vmem>>, vector<2x128xf32>,
    return
  }
}

</mosaic_0001>

<bundles_post_ra>
// kernel: forward.1
= control target key start
LH: loop header
LB: loop body
LE: loop exit
PB: predicated region body
PF: predicated region fallthrough
CT: control target
= control target key end

     0   :  { %12 = vsyncpa [#allocation3], 0  ;;  %s956_s0 = inlined_call_operand.hbm [shape: f32[2,16], index: 0, kind: input, shape index: {}]   ;;  %s957_s1 = inlined_call_operand.hbm [shape: bf16[16,256], index: 1, kind: input, shape index: {}]   ;;  %s958_s2 = inlined_call_operand.vmem [shape: f32[1,256], index: 2, kind: input, shape index: {}]   ;;  %s959_s3 = inlined_call_operand.hbm [shape: bf16[256,256], index: 3, kind: input, shape index: {}]   ;;  %s960_s4 = inlined_call_operand.vmem [shape: f32[1,256], index: 4, kind: input, shape index: {}]   ;;  %s961_s5 = inlined_call_operand.hbm [shape: bf16[256,128], index: 5, kind: input, shape index: {}]   ;;  %s962_s6 = inlined_call_operand.vmem [shape: f32[1,128], index: 6, kind: input, shape index: {}]   ;;  %s963_s7 = inlined_call_operand.vmem [shape: f32[2,128], index: 7, kind: output, shape index: {}]  }
   0x1   :  { %13 = vsyncpa [#allocation5], 0 }
   0x2   :  { %14 = vsyncpa [#allocation8], 0  ;;  %s841_s24 = smov [#allocation4]   ;;  %s747_s28 = scalar_lea.hbm %s957_s1, 256 }
   0x3   :  { %s30_s25 = sshll.u32 %s841_s24, 4  ;;  %p748_p0 = scmp.ne.s32.totalorder %s957_s1, %s747_s28  ;;  %s31_s25 = int_to_ptr.vmem [resolvable:$true] %s30_s25 }
   0x4   :  { %p751_p1 = scmp.lt.u32.totalorder %s747_s28, %s957_s1 }
   0x6   :  { %p753_p2 = pnand %p751_p1, %p748_p0 }
   0x8   :  { %756 = shalt.err (!%p753_p2)
}
   0x9   :  { %s757_s10 = scalar_lea.vmem %s31_s25, 256  ;;  %p762_p4 = scmp.lt.s32.totalorder %s31_s25, %s31_s25 }
   0xa   :  { %p758_p3 = scmp.ne.s32.totalorder %s31_s25, %s757_s10  ;;  %p763_p5 = scmp.lt.s32.totalorder %s757_s10, %s757_s10 }
   0xc   :  { %p764_p6 = por %p763_p5, %p762_p4 }
   0xe   :  { %p765_p7 = pnand %p764_p6, %p758_p3 }
  0x10   :  { %768 = shalt.err (!%p765_p7)
}
  0x11   :  { %s842_s11 = smov 128   ;;  %s843_s12 = smov 8  }
  0x12   :  { %36 = dma.hbm_to_vmem [thread:$0]  %s957_s1, 256, %s31_s25, [#allocation5], %s842_s11, %s842_s11, %s843_s12  }
  0x13   :  { %s844_s15 = smov [#allocation2]   ;;  %s845_s17 = smov [#allocation6]  }
  0x14   :  { %s21_s16 = sshll.u32 %s844_s15, 4  ;;  %s44_s18 = sshll.u32 %s845_s17, 4  ;;  %s22_s16 = int_to_ptr.vmem [resolvable:$true] %s21_s16  ;;  %s45_s18 = int_to_ptr.vmem [resolvable:$true] %s44_s18 }
  0x15   :  { %s769_s21 = scalar_lea.hbm %s956_s0, 32 }
  0x16   :  { %p770_p8 = scmp.ne.s32.totalorder %s956_s0, %s769_s21  ;;  %p773_p9 = scmp.lt.u32.totalorder %s769_s21, %s956_s0 }
  0x18   :  { %p775_p10 = pnand %p773_p9, %p770_p8 }
  0x1a   :  { %778 = shalt.err (!%p775_p10)
}
  0x1b   :  { %s779_s1 = scalar_lea.vmem %s22_s16, 32  ;;  %p784_p12 = scmp.lt.s32.totalorder %s22_s16, %s22_s16 }
  0x1c   :  { %p780_p11 = scmp.ne.s32.totalorder %s22_s16, %s779_s1  ;;  %p785_p13 = scmp.lt.s32.totalorder %s779_s1, %s779_s1 }
  0x1e   :  { %p786_p0 = por %p785_p13, %p784_p12 }
  0x20   :  { %p787_p1 = pnand %p786_p0, %p780_p11 }
  0x22   :  { %790 = shalt.err (!%p787_p1)
}
  0x23   :  { %24 = dma.hbm_to_vmem [thread:$0]  %s956_s0, 32, %s22_s16, [#allocation3]  }
  0x24   :  { %s791_s30 = scalar_lea.hbm %s959_s3, 4096 }
  0x25   :  { %p792_p2 = scmp.ne.s32.totalorder %s959_s3, %s791_s30  ;;  %p795_p3 = scmp.lt.u32.totalorder %s791_s30, %s959_s3 }
  0x27   :  { %p797_p4 = pnand %p795_p3, %p792_p2 }
  0x29   :  { %800 = shalt.err (!%p797_p4)
}
  0x2a   :  { %s801_s14 = scalar_lea.vmem %s45_s18, 4096  ;;  %p806_p6 = scmp.lt.s32.totalorder %s45_s18, %s45_s18 }
  0x2b   :  { %p802_p5 = scmp.ne.s32.totalorder %s45_s18, %s801_s14  ;;  %p807_p7 = scmp.lt.s32.totalorder %s801_s14, %s801_s14 }
  0x2d   :  { %p808_p8 = por %p807_p7, %p806_p6 }
  0x2f   :  { %p809_p9 = pnand %p808_p8, %p802_p5 }
  0x31   :  { %812 = shalt.err (!%p809_p9)
}
  0x32   :  { %50 = dma.hbm_to_vmem [thread:$0]  %s959_s3, 4096, %s45_s18, [#allocation5], %s842_s11, %s842_s11, %s843_s12  }
  0x33   :  { %s846_s16 = smov [#allocation7]   ;;  %s813_s21 = scalar_lea.hbm %s961_s5, 2048 }
  0x34   :  { %s58_s17 = sshll.u32 %s846_s16, 4  ;;  %p814_p10 = scmp.ne.s32.totalorder %s961_s5, %s813_s21  ;;  %s59_s17 = int_to_ptr.vmem [resolvable:$true] %s58_s17 }
  0x35   :  { %p817_p11 = scmp.lt.u32.totalorder %s813_s21, %s961_s5 }
  0x37   :  { %p819_p12 = pnand %p817_p11, %p814_p10 }
  0x39   :  { %822 = shalt.err (!%p819_p12)
}
  0x3a   :  { %s823_s1 = scalar_lea.vmem %s59_s17, 2048  ;;  %p828_p0 = scmp.lt.s32.totalorder %s59_s17, %s59_s17 }
  0x3b   :  { %p824_p13 = scmp.ne.s32.totalorder %s59_s17, %s823_s1  ;;  %p829_p1 = scmp.lt.s32.totalorder %s823_s1, %s823_s1 }
  0x3d   :  { %p830_p2 = por %p829_p1, %p828_p0 }
  0x3f   :  { %p831_p3 = pnand %p830_p2, %p824_p13 }
  0x41   :  { %834 = shalt.err (!%p831_p3)
}
  0x42   :  { %s847_s3 = smov 64   ;;  %s848_s11 = smov 4  }
  0x43   :  { %64 = dma.hbm_to_vmem [thread:$0]  %s961_s5, 2048, %s59_s17, [#allocation8], %s847_s3, %s847_s3, %s848_s11  }
  0x44   :  { %835 = dma.done.wait [#allocation3], 32  }
  0x45   :  { %836 = vsyncadd [#allocation3], 4294967264 }
  0x46   :  { %837 = dma.done.wait [#allocation5], 4352  }
  0x47   :  { %838 = vsyncadd [#allocation5], 4294962944 }
  0x48   :  { %839 = dma.done.wait [#allocation8], 2048  }
  0x49   :  { %840 = vsyncadd [#allocation8], 4294965248  ;;  %v849_v0 = vmov 0   ;;  %v678_v1 = vld [vmem:[#allocation4 + $0x4] ss:$8 sps:$4 sm:$0xff]   ;;  %vm106_vm0 = vcmask 130048   ;;  %v86_v49 = vlaneseq }
  0x4a   :  { %142 = vmatprep.mubr.bf16.mxu0 %v849_v0  ;;  %v680_v2 = vld [vmem:[#allocation4] ss:$8 sps:$4 sm:$0xff]   ;;  %v80_v3 = vld [vmem:[#allocation2] sm:$0x3]  ;;  %110 = vmatprep.subr.bf16.mxu0 %v678_v1  ;;  %v683_v6 = vld [vmem:[#allocation6] ss:$8 sps:$4 sm:$0xff]  }
  0x4b   :  { %v81_v4 = vpack.c.bf16 %v80_v3, %v80_v3  ;;  %v681_v5 = vld [vmem:[#allocation6 + $0x4] ss:$8 sps:$4 sm:$0xff]   ;;  %111 = vmatpush1.bf16.msra.mxu0 %v680_v2  ;;  %v684_v7 = vld [vmem:[#allocation6 + $0x14] ss:$8 sps:$4 sm:$0xff]   ;;  %v686_v8 = vld [vmem:[#allocation6 + $0x10] ss:$8 sps:$4 sm:$0xff]  }
  0x4c   :  { %359 = vmatprep.subr.bf16.mxu1 %v681_v5  ;;  %v687_v9 = vld [vmem:[#allocation6 + $0x24] ss:$8 sps:$4 sm:$0xff]   ;;  %v689_v10 = vld [vmem:[#allocation6 + $0x20] ss:$8 sps:$4 sm:$0xff]   ;;  %v690_v11 = vld [vmem:[#allocation6 + $0x34] ss:$8 sps:$4 sm:$0xff]  }
  0x4d   :  { %360 = vmatpush1.bf16.msra.mxu1 %v683_v6  ;;  %v692_v12 = vld [vmem:[#allocation6 + $0x30] ss:$8 sps:$4 sm:$0xff]   ;;  %v693_v13 = vld [vmem:[#allocation6 + $0x44] ss:$8 sps:$4 sm:$0xff]   ;;  %v695_v14 = vld [vmem:[#allocation6 + $0x40] ss:$8 sps:$4 sm:$0xff]  }
  0x4e   :  { %597 = vmatmul.mubr.msk.bf16.vlgmr.msra.gmra.mrb[0].mxu0 %vm106_vm0, %v81_v4  ;;  %361 = vmatprep.subr.bf16.mxu1 %v684_v7  ;;  %v696_v15 = vld [vmem:[#allocation6 + $0x54] ss:$8 sps:$4 sm:$0xff]   ;;  %v698_v16 = vld [vmem:[#allocation6 + $0x50] ss:$8 sps:$4 sm:$0xff]   ;;  %v699_v17 = vld [vmem:[#allocation6 + $0x64] ss:$8 sps:$4 sm:$0xff]  }
  0x4f   :  { %v701_v18 = vld [vmem:[#allocation6 + $0x60] ss:$8 sps:$4 sm:$0xff]   ;;  %v702_v19 = vld [vmem:[#allocation6 + $0x74] ss:$8 sps:$4 sm:$0xff]   ;;  %v704_v20 = vld [vmem:[#allocation6 + $0x70] ss:$8 sps:$4 sm:$0xff]  }
  0x50   :  { %v705_v21 = vld [vmem:[#allocation6 + $0x84] ss:$8 sps:$4 sm:$0xff]   ;;  %v707_v22 = vld [vmem:[#allocation6 + $0x80] ss:$8 sps:$4 sm:$0xff]   ;;  %v708_v23 = vld [vmem:[#allocation6 + $0x94] ss:$8 sps:$4 sm:$0xff]  }
  0x51   :  { %362 = vmatpush1.bf16.msra.mxu1 %v686_v8  ;;  %v710_v24 = vld [vmem:[#allocation6 + $0x90] ss:$8 sps:$4 sm:$0xff]   ;;  %v711_v25 = vld [vmem:[#allocation6 + $0xa4] ss:$8 sps:$4 sm:$0xff]   ;;  %v713_v26 = vld [vmem:[#allocation6 + $0xa0] ss:$8 sps:$4 sm:$0xff]  }
  0x52   :  { %363 = vmatprep.subr.bf16.mxu1 %v687_v9  ;;  %v714_v27 = vld [vmem:[#allocation6 + $0xb4] ss:$8 sps:$4 sm:$0xff]   ;;  %v716_v28 = vld [vmem:[#allocation6 + $0xb0] ss:$8 sps:$4 sm:$0xff]   ;;  %v717_v29 = vld [vmem:[#allocation6 + $0xc4] ss:$8 sps:$4 sm:$0xff]  }
  0x53   :  { %v719_v30 = vld [vmem:[#allocation6 + $0xc0] ss:$8 sps:$4 sm:$0xff]   ;;  %v720_v31 = vld [vmem:[#allocation6 + $0xd4] ss:$8 sps:$4 sm:$0xff]   ;;  %v722_v32 = vld [vmem:[#allocation6 + $0xd0] ss:$8 sps:$4 sm:$0xff]  }
  0x54   :  { %v723_v33 = vld [vmem:[#allocation6 + $0xe4] ss:$8 sps:$4 sm:$0xff]   ;;  %v725_v34 = vld [vmem:[#allocation6 + $0xe0] ss:$8 sps:$4 sm:$0xff]   ;;  %v726_v35 = vld [vmem:[#allocation6 + $0xf4] ss:$8 sps:$4 sm:$0xff]  }
  0x55   :  { %364 = vmatpush1.bf16.msra.mxu1 %v689_v10  ;;  %v728_v36 = vld [vmem:[#allocation6 + $0xf0] ss:$8 sps:$4 sm:$0xff]   ;;  %v729_v37 = vld [vmem:[#allocation7 + $0x40] sm:$0xff]   ;;  %v731_v39 = vld [vmem:[#allocation7 + $0x48] sm:$0xff]   ;;  %v87_v50 = vshrl.u32 %v86_v49, 7 }
  0x56   :  { %365 = vmatprep.subr.bf16.mxu1 %v690_v11  ;;  %v730_v38 = vld [vmem:[#allocation7] sm:$0xff]   ;;  %647 = vmatprep.subr.bf16.mxu0 %v729_v37  ;;  %v732_v40 = vld [vmem:[#allocation7 + $0x8] sm:$0xff]   ;;  %v733_v41 = vld [vmem:[#allocation7 + $0x50] sm:$0xff]  }
  0x57   :  { %648 = vmatpush3.bf16.msra.mxu0 %v730_v38  ;;  %v734_v42 = vld [vmem:[#allocation7 + $0x10] sm:$0xff]   ;;  %v735_v43 = vld [vmem:[#allocation7 + $0x58] sm:$0xff]   ;;  %v737_v45 = vld [vmem:[#allocation7 + $0x60] sm:$0xff]   ;;  %v88_v51 = vsub.s32 0, %v87_v50  ;;  %v92_v53 = vsub.s32 1, %v87_v50 }
  0x58   :  { %649 = vmatprep.subr.bf16.mxu0 %v731_v39  ;;  %v736_v44 = vld [vmem:[#allocation7 + $0x18] sm:$0xff]   ;;  %v738_v46 = vld [vmem:[#allocation7 + $0x20] sm:$0xff]   ;;  %v739_v47 = vld [vmem:[#allocation7 + $0x68] sm:$0xff]  }
  0x59   :  { %366 = vmatpush1.bf16.msra.mxu1 %v692_v12  ;;  %v740_v48 = vld [vmem:[#allocation7 + $0x28] sm:$0xff]   ;;  %v84_v52 = vld [vmem:[%s958_s2] sm:$0x3]  ;;  %v741_v2 = vld [vmem:[#allocation7 + $0x70] sm:$0xff]  }
  0x5a   :  { %367 = vmatprep.subr.bf16.mxu1 %v693_v13  ;;  %v89_v54 = vrot.slane %v84_v52, %v88_v51  ;;  %v93_v55 = vrot.slane %v84_v52, %v92_v53  ;;  %v742_v3 = vld [vmem:[#allocation7 + $0x30] sm:$0xff]   ;;  %v743_v4 = vld [vmem:[#allocation7 + $0x78] sm:$0xff]   ;;  %v187_v6 = vld [vmem:[%s960_s4] sm:$0x3] }
  0x5b   :  { %650 = vmatpush3.bf16.msra.mxu0 %v732_v40  ;;  %v744_v5 = vld [vmem:[#allocation7 + $0x38] sm:$0xff]   ;;  %v192_v7 = vrot.slane %v187_v6, %v88_v51  ;;  %v196_v8 = vrot.slane %v187_v6, %v92_v53 }
  0x5c   :  { %651 = vmatprep.subr.bf16.mxu0 %v733_v41 }
  0x5d   :  { %368 = vmatpush1.bf16.msra.mxu1 %v695_v14 }
  0x5e   :  { %369 = vmatprep.subr.bf16.mxu1 %v696_v15 }
  0x5f   :  { %652 = vmatpush3.bf16.msra.mxu0 %v734_v42 }
  0x60   :  { %653 = vmatprep.subr.bf16.mxu0 %v735_v43 }
  0x61   :  { %370 = vmatpush1.bf16.msra.mxu1 %v698_v16 }
  0x62   :  { %371 = vmatprep.subr.bf16.mxu1 %v699_v17 }
  0x63   :  { %654 = vmatpush3.bf16.msra.mxu0 %v736_v44 }
  0x64   :  { %655 = vmatprep.subr.bf16.mxu0 %v737_v45 }
  0x65   :  { %372 = vmatpush1.bf16.msra.mxu1 %v701_v18 }
  0x66   :  { %373 = vmatprep.subr.bf16.mxu1 %v702_v19 }
  0x67   :  { %656 = vmatpush3.bf16.msra.mxu0 %v738_v46 }
  0x68   :  { %657 = vmatprep.subr.bf16.mxu0 %v739_v47 }
  0x69   :  { %374 = vmatpush1.bf16.msra.mxu1 %v704_v20  ;;  %v630_v20 = vld [vmem:[%s962_s6] ss:$0 sm:$0xff] }
  0x6a   :  { %375 = vmatprep.subr.bf16.mxu1 %v705_v21 }
  0x6b   :  { %658 = vmatpush3.bf16.msra.mxu0 %v740_v48 }
  0x6c   :  { %659 = vmatprep.subr.bf16.mxu0 %v741_v2 }
  0x6d   :  { %376 = vmatpush1.bf16.msra.mxu1 %v707_v22 }
  0x6e   :  { %377 = vmatprep.subr.bf16.mxu1 %v708_v23 }
  0x6f   :  { %660 = vmatpush3.bf16.msra.mxu0 %v742_v3 }
  0x70   :  { %661 = vmatprep.subr.bf16.mxu0 %v743_v4 }
  0x71   :  { %378 = vmatpush1.bf16.msra.mxu1 %v710_v24 }
  0x72   :  { %379 = vmatprep.subr.bf16.mxu1 %v711_v25 }
  0x73   :  { %662 = vmatpush3.bf16.msra.mxu0 %v744_v5 }
  0x75   :  { %380 = vmatpush1.bf16.msra.mxu1 %v713_v26 }
  0x76   :  { %381 = vmatprep.subr.bf16.mxu1 %v714_v27  ;;  %v584_v27 = vand.u32 127, %v86_v49 }
  0x78   :  { %vm585_vm1 = vcmp.lt.s32.totalorder %v584_v27, 8 }
  0x79   :  { %382 = vmatpush1.bf16.msra.mxu1 %v716_v28 }
  0x7a   :  { %383 = vmatprep.subr.bf16.mxu1 %v717_v29 }
  0x7d   :  { %384 = vmatpush1.bf16.msra.mxu1 %v719_v30 }
  0x7e   :  { %385 = vmatprep.subr.bf16.mxu1 %v720_v31 }
  0x81   :  { %386 = vmatpush1.bf16.msra.mxu1 %v722_v32 }
  0x82   :  { %387 = vmatprep.subr.bf16.mxu1 %v723_v33 }
  0x85   :  { %388 = vmatpush1.bf16.msra.mxu1 %v725_v34 }
  0x86   :  { %389 = vmatprep.subr.bf16.mxu1 %v726_v35 }
  0x89   :  { %390 = vmatpush1.bf16.msra.mxu1 %v728_v36 }
 0x121   :  { %v144_v56 = vpop.f32.mrb[0].mxu0 }
 0x122   :  { %v145_v57 = vadd.f32 %v144_v56, %v89_v54  ;;  %v146_v58 = vpop.f32.mrb[1].mxu0 }
 0x123   :  { %v147_v59 = vadd.f32 %v146_v58, %v93_v55  ;;  %v148_v60 = vpop.f32.mrb[2].mxu0 }
 0x124   :  { %v151_v61 = vmax.f32 %v145_v57, 0.0  ;;  %v149_v62 = vpop.f32.mrb[3].mxu0 }
 0x125   :  { %v152_v63 = vmax.f32 %v147_v59, 0.0 }
 0x126   :  { %v153_v1 = vpack.c.bf16 %v151_v61, %v151_v61 }
 0x127   :  { %v154_v0 = vpack.c.bf16 %v152_v63, %v152_v63 }
 0x129   :  { %391 = vmatprep.mubr.bf16.mxu1 %v154_v0 }
 0x12a   :  { %392 = vmatmul.mubr.bf16.vlgmr.msra.gmra.mrb[0].mxu1 %v153_v1 }
 0x1fd   :  { %v393_v9 = vpop.f32.mrb[0].mxu1 }
 0x1fe   :  { %v394_v10 = vadd.f32 %v393_v9, %v192_v7  ;;  %v395_v11 = vpop.f32.mrb[1].mxu1 }
 0x1ff   :  { %v396_v12 = vadd.f32 %v395_v11, %v196_v8  ;;  %v397_v13 = vpop.f32.mrb[2].mxu1 }
 0x200   :  { %v400_v14 = vmax.f32 %v394_v10, 0.0  ;;  %v398_v15 = vpop.f32.mrb[3].mxu1 }
 0x201   :  { %v401_v16 = vmax.f32 %v396_v12, 0.0 }
 0x202   :  { %v402_v18 = vpack.c.bf16 %v400_v14, %v400_v14 }
 0x203   :  { %v403_v17 = vpack.c.bf16 %v401_v16, %v401_v16 }
 0x205   :  { %571 = vmatprep.mubr.bf16.mxu0 %v403_v17 }
 0x206   :  { %572 = vmatmul.mubr.bf16.vlgmr.msra.gmra.mrb[4].mxu0 %v402_v18 }
 0x2d9   :  { %v663_v19 = vpop.f32.mrb[4].mxu0 }
 0x2da   :  { %v664_v21 = vpop.f32.mrb[5].mxu0 }
 0x2db   :  { %v665_v22 = vadd.f32 %v664_v21, %v663_v19  ;;  %v666_v23 = vpop.f32.mrb[6].mxu0 }
 0x2dc   :  { %v667_v24 = vpop.f32.mrb[7].mxu0 }
 0x2dd   :  { %v574_v25 = vadd.f32 %v665_v22, %v630_v20 }
 0x2df   :  { %745 = vtanh.f32 %v574_v25 }
 0x2e9   :  { %v746_v26 = vpop.eup %745 }
 0x2ea   :  { %v580_v28 = vadd.f32 1.0, %v746_v26 }
 0x2ec   :  { %v581_v29 = vmul.f32 3.5, %v580_v28 }
 0x2ee   :  { %v582_v30 = vadd.f32 -5.0, %v581_v29 }
 0x2f0   :  { %v586_v31 = vsel %vm585_vm1, %v574_v25, %v582_v30 }
 0x2f1   :  { %587 = vst [vmem:[%s963_s7] sm:$0x3] %v586_v31 }
 0x2f2   :  { %592 = vsyncpa [#allocation3], 1 }
 0x2f3   :  { %593 = vsyncpa [#allocation5], 1 }
 0x2f4   :  { %594 = vsyncpa [#allocation8], 1 }

</bundles_post_ra>
